<compile_context>
chip_gen: v7x
topology: tpu7x:2x2x1
jax: 0.10.0
libtpu: 0.0.40
codegen_flags: <defaults>
</compile_context>

<pallas_src>
import functools

import jax
import jax.numpy as jnp
from jax.experimental import pallas as pl
from jax.experimental.pallas import tpu as pltpu

LANE = 128


def _round_up(v, m):
    return (v + m - 1) // m * m


def _vmem_capacity_bytes():
    try:
        return int(pltpu.get_tpu_info().vmem_capacity_bytes)
    except Exception:
        return 64 * 1024 * 1024  # conservative (v7x per-TC) fallback


def _pick_gcn_tiles(n, hp2):
    """VMEM-aware (tm, tk) for the GCN aggregation kernel.

    Per-grid-step footprint (pipelined inputs/outputs are double-buffered):
      adj : 2 * tm * tk  * 2 B  (bf16)
      h   : 2 * tk * hp2 * 2 B  (bf16)
      z   : 2 * tm * hp2 * 4 B  (f32)
      acc :     tm * hp2 * 4 B  (f32 scratch)
    """
    vmem = _vmem_capacity_bytes()
    budget = int(vmem * 0.55)  # headroom for bias/colsum/compiler scratch

    tm_cands = [t for t in (1024, 512, 256, 128, 64, 32, 16, 8)
                if t <= n and n % t == 0] or [n]
    tk_cands = [t for t in (4096, 2048, 1024, 512, 256, 128)
                if t <= n and n % t == 0] or [n]

    best = (min(tm_cands), min(tk_cands))
    best_key = (-1, -1)
    for tm in tm_cands:
        for tk in tk_cands:
            fp = (2 * tm * tk * 2 + 2 * tk * hp2 * 2
                  + 2 * tm * hp2 * 4 + tm * hp2 * 4)
            if fp <= budget:
                # maximise work per step; prefer taller row tiles (fewer h re-reads)
                key = (tm * tk, tm)
                if key > best_key:
                    best_key = key
                    best = (tm, tk)
    return best


# ----------------------------------------------------------------------------
# GCN aggregation kernel      grid = (2 views, row tiles, k tiles)
#   h_all[v] packs [h_v | h_v[perm_v]] along the lane axis (2*Hp lanes), so
#   one adjacency stream produces both the clean and corrupted embedding:
#     z_all[v] = PReLU(adj[v] @ h_all[v] + [b_v | b_v])
#   The graph-summary column sum (clean half only) rides along the epilogue.
# ----------------------------------------------------------------------------
def gcn_agg_kernel(adj_ref, h_ref, b_ref, alpha_ref, z_ref, colsum_ref,
                   acc_ref, *, hp):
    v = pl.program_id(0)
    i = pl.program_id(1)
    k = pl.program_id(2)
    last_k = k == pl.num_programs(2) - 1

    @pl.when(k == 0)
    def _():
        acc_ref[...] = jnp.zeros_like(acc_ref)

    acc_ref[...] += jnp.dot(adj_ref[...], h_ref[...],
                            preferred_element_type=jnp.float32)

    @pl.when(jnp.logical_and(last_k, i == 0))
    def _():
        colsum_ref[...] = jnp.zeros_like(colsum_ref)

    @pl.when(last_k)
    def _():
        acc = acc_ref[...] + b_ref[...]          # (tm, 2*Hp) + (1, 2*Hp), f32 epilogue
        alpha = alpha_ref[v]                     # scalar PReLU slope from SMEM
        z = jnp.where(acc > 0.0, acc, alpha * acc)
        z_ref[...] = z
        # graph-summary column sums over the *clean* 128-lane half only
        colsum_ref[...] += jnp.sum(z[:, :hp], axis=0, keepdims=True)


def gcn_aggregate(adjs_bf16, h_all_bf16, biases2, alphas, hp):
    V, N, _ = adjs_bf16.shape
    _, _, Hp2 = h_all_bf16.shape
    tm, tk = _pick_gcn_tiles(N, Hp2)
    vmem = _vmem_capacity_bytes()
    n_row_tiles = N // tm

    cost = pl.CostEstimate(
        flops=int(2 * V * N * N * Hp2),
        transcendentals=0,
        bytes_accessed=int(adjs_bf16.size * 2                  # adj: once per view
                           + n_row_tiles * h_all_bf16.size * 2  # h: once per row tile
                           + V * N * Hp2 * 4                    # z writeback
                           + V * hp * 4),                       # colsum
    )

    kern = functools.partial(gcn_agg_kernel, hp=hp)
    return pl.pallas_call(
        kern,
        grid=(V, N // tm, N // tk),
        in_specs=[
            pl.BlockSpec((None, tm, tk), lambda v, i, k: (v, i, k)),   # adj tile
            pl.BlockSpec((None, tk, Hp2), lambda v, i, k: (v, k, 0)),  # packed h
            pl.BlockSpec((None, 1, Hp2), lambda v, i, k: (v, 0, 0)),   # [b | b]
            pl.BlockSpec(memory_space=pltpu.MemorySpace.SMEM),         # PReLU slopes (V,)
        ],
        out_specs=(
            pl.BlockSpec((None, tm, Hp2), lambda v, i, k: (v, i, 0)),  # z (written at last k)
            pl.BlockSpec((None, 1, hp), lambda v, i, k: (v, 0, 0)),    # colsum accumulator
        ),
        out_shape=(
            jax.ShapeDtypeStruct((V, N, Hp2), jnp.float32),
            jax.ShapeDtypeStruct((V, 1, hp), jnp.float32),
        ),
        scratch_shapes=[pltpu.VMEM((tm, Hp2), jnp.float32)],
        compiler_params=pltpu.CompilerParams(
            dimension_semantics=("parallel", "arbitrary", "arbitrary"),
            vmem_limit_bytes=int(vmem * 0.8),
        ),
        cost_estimate=cost,
    )(adjs_bf16, h_all_bf16, biases2, alphas)


# ----------------------------------------------------------------------------
# Graph / augmentation glue (structure setup in plain JAX)
# ----------------------------------------------------------------------------
def build_norm_adj(edge_index, edge_weight, num_nodes):
    """Dense GCN-normalized adjacency: D^-1/2 (A + I) D^-1/2."""
    src, dst = edge_index
    a = jnp.zeros((num_nodes, num_nodes), jnp.float32)
    a = a.at[src, dst].add(edge_weight)
    a = a.at[dst, src].add(edge_weight)                      # symmetrize
    a = a + jnp.eye(num_nodes, dtype=jnp.float32)            # self loops
    deg = jnp.sum(a, axis=1)
    dinv = 1.0 / jnp.sqrt(jnp.maximum(deg, 1e-12))
    return a * dinv[:, None] * dinv[None, :]


def ppr_diffusion(adj_norm, alpha=0.2):
    """PPR diffusion: alpha * (I - (1-alpha) * A_norm)^-1 (closed form, glue)."""
    # TODO(synk): PyG's PPRDiffusion/GDC typically re-normalizes the diffusion
    # matrix after the inverse; verify against the exact augmentor config.
    n = adj_norm.shape[0]
    return alpha * jnp.linalg.inv(
        jnp.eye(n, dtype=jnp.float32) - (1.0 - alpha) * adj_norm)


# ----------------------------------------------------------------------------
# MVGEncoder forward
# ----------------------------------------------------------------------------
def mvg_encoder_forward(params, x, edge_index, edge_weight, perm_key):
    N, _ = x.shape
    H = params["hidden_dim"]
    Hp = params["ws"].shape[-1]
    batch_size = N

    # augmentor: aug1 = Identity, aug2 = PPRDiffusion(alpha=0.2); switch=False
    adj1 = build_norm_adj(edge_index, edge_weight, N)
    adj2 = ppr_diffusion(adj1, alpha=0.2)
    adjs = jnp.stack([adj1, adj2]).astype(jnp.bfloat16)          # [2, N, N] bf16

    # per-view feature transform h_v = x @ W_v. K = F is tiny (one underfilled
    # MXU pass) so this stays in plain JAX (per review) instead of a kernel.
    h = jnp.einsum("nf,vfh->vnh", x.astype(jnp.bfloat16), params["ws"],
                   preferred_element_type=jnp.float32)           # [2, N, Hp] f32

    # corruption: (P x) W == P (x W) -> permute rows of h instead of a re-matmul.
    # Pack clean + corrupted along the lane axis so one adjacency stream feeds
    # a 256-lane MXU output (halves adjacency HBM traffic).
    k1, k2 = jax.random.split(perm_key)
    perm1 = jax.random.permutation(k1, N)
    perm2 = jax.random.permutation(k2, N)
    h_all = jnp.stack([
        jnp.concatenate([h[0], h[0][perm1]], axis=-1),
        jnp.concatenate([h[1], h[1][perm2]], axis=-1),
    ]).astype(jnp.bfloat16)                                      # [2, N, 2*Hp]

    biases2 = jnp.concatenate([params["bs"], params["bs"]], axis=-1)  # [2, 1, 2*Hp]

    # one batched GCN aggregation call (clean + corrupted fused per view)
    z_all, colsum = gcn_aggregate(adjs, h_all, biases2, params["alphas"], Hp)

    z1, z1n = z_all[0, :, :H], z_all[0, :, Hp:Hp + H]
    z2, z2n = z_all[1, :, :H], z_all[1, :, Hp:Hp + H]

    # shared projection head on sigmoid(node-mean): tiny (1,H)@(H,H) -> plain JAX
    wp_t, bp = params["wp_t"], params["bp"]
    g1 = jax.nn.sigmoid(colsum[0, :, :H] / N) @ wp_t + bp
    g2 = jax.nn.sigmoid(colsum[1, :, :H] / N) @ wp_t + bp

    return z1, z2, g1, g2, z1n, z2n, jnp.arange(N, dtype=jnp.int32), batch_size


# ----------------------------------------------------------------------------
# main
# ----------------------------------------------------------------------------
if __name__ == "__main__":
    key = jax.random.PRNGKey(0)
    N, F, H = 32, 16, 32          # nodes, input features, hidden_dim
    Hp = _round_up(H, LANE)       # lane-dense padded hidden dim (128)

    k_x, k_e, k_w1, k_w2, k_wp, k_bp, k_perm = jax.random.split(key, 7)

    # node features
    x = jax.random.normal(k_x, (N, F), dtype=jnp.float32)

    # deterministic small graph: ring edges + a few random extras
    ring_src = jnp.arange(N, dtype=jnp.int32)
    ring_dst = (ring_src + 1) % N
    extra_src = jax.random.randint(k_e, (16,), 0, N, dtype=jnp.int32)
    extra_dst = (extra_src + 5) % N
    edge_index = jnp.stack(
        [jnp.concatenate([ring_src, extra_src]), jnp.concatenate([ring_dst, extra_dst])]
    )
    edge_weight = jnp.ones((edge_index.shape[1],), jnp.float32)

    # deterministic parameters
    glorot = jnp.sqrt(6.0 / (F + H))
    bound_p = 1.0 / jnp.sqrt(jnp.float32(H))   # mimics torch_geometric `uniform(hidden_dim, w)`
    w1 = jax.random.uniform(k_w1, (F, H), jnp.float32, -glorot, glorot)
    w2 = jax.random.uniform(k_w2, (F, H), jnp.float32, -glorot, glorot)
    b1 = jnp.zeros((H,), jnp.float32)
    b2 = jnp.zeros((H,), jnp.float32)

    def pad_h(a):
        return jnp.pad(a, [(0, 0)] * (a.ndim - 1) + [(0, Hp - a.shape[-1])])

    params = {
        "hidden_dim": H,
        # bf16 matmul inputs (f32 MXU accumulation inside the kernel)
        "ws": jnp.stack([pad_h(w1), pad_h(w2)]).astype(jnp.bfloat16),   # [2, F, Hp]
        "bs": jnp.stack([pad_h(b1), pad_h(b2)])[:, None, :],            # [2, 1, Hp] f32
        "alphas": jnp.array([0.25, 0.25], jnp.float32),                 # PReLU slopes (SMEM)
        # projection Linear(H, H): weight pre-transposed to [in, out]
        "wp_t": jax.random.uniform(k_wp, (H, H), jnp.float32, -bound_p, bound_p),
        "bp": jax.random.uniform(k_bp, (H,), jnp.float32, -bound_p, bound_p),
    }

    out = mvg_encoder_forward(params, x, edge_index, edge_weight, k_perm)
    z1, z2, g1, g2, z1n, z2n, idx, batch_size = out
    jax.block_until_ready((z1, z2, g1, g2, z1n, z2n, idx))

    assert z1.shape == (N, H) and z2.shape == (N, H)
    assert g1.shape == (1, H) and g2.shape == (1, H)
    assert z1n.shape == (N, H) and z2n.shape == (N, H)
    assert idx.shape == (N,) and batch_size == N
    assert bool(jnp.isfinite(z1).all() and jnp.isfinite(z1n).all())
    assert bool(jnp.isfinite(g1).all() and jnp.isfinite(g2).all())
    print("KERNEL_OK")
</pallas_src>

<mosaic_0001>
module attributes {stable_mosaic.version = 11 : i64} {
  func.func @gcn_agg_kernel(%arg0: i32, %arg1: i32, %arg2: i32, %arg3: memref<1x32x32xbf16, #tpu.memory_space<vmem>>, %arg4: memref<1x32x256xbf16, #tpu.memory_space<vmem>>, %arg5: memref<1x1x256xf32, #tpu.memory_space<vmem>>, %arg6: memref<2xf32, #tpu.memory_space<smem>>, %arg7: memref<1x32x256xf32, #tpu.memory_space<vmem>>, %arg8: memref<1x1x128xf32, #tpu.memory_space<vmem>>, %arg9: memref<32x256xf32, #tpu.memory_space<vmem>>) attributes {dimension_semantics = [#tpu.dimension_semantics<parallel>, #tpu.dimension_semantics<arbitrary>, #tpu.dimension_semantics<arbitrary>], iteration_bounds = array<i64: 2, 1, 1>, scalar_prefetch = 0 : i64, scratch_operands = 1 : i64, tpu.core_type = #tpu.core_type<tc>, window_params = [{transform_indices = @transform_0, window_bounds = array<i64: 1, 32, 32>}, {transform_indices = @transform_1, window_bounds = array<i64: 1, 32, 256>}, {transform_indices = @transform_2, window_bounds = array<i64: 1, 1, 256>}, {transform_indices = @transform_3, window_bounds = array<i64: 2>}, {transform_indices = @transform_4, window_bounds = array<i64: 1, 32, 256>}, {transform_indices = @transform_5, window_bounds = array<i64: 1, 1, 128>}]} {
    %c0_i32 = arith.constant 0 : i32
    %0 = arith.cmpi eq, %arg2, %c0_i32 : i32
    %c0_i32_0 = arith.constant 0 : i32
    %1 = arith.cmpi eq, %arg2, %c0_i32_0 : i32
    %2 = arith.extui %1 : i1 to i32
    %c0_i32_1 = arith.constant 0 : i32
    %3 = arith.cmpi ne, %2, %c0_i32_1 : i32
    scf.if %3 {
      %cst_14 = arith.constant 0.000000e+00 : f32
      %18 = vector.broadcast %cst_14 : f32 to vector<32x256xf32>
      %c0_15 = arith.constant 0 : index
      %c0_16 = arith.constant 0 : index
      %19 = vector.load %arg9[%c0_15, %c0_16] : memref<32x256xf32, #tpu.memory_space<vmem>>, vector<32x256xf32>
      tpu.vector_store %arg9[%c0_15, %c0_16], %18 {strides = array<i32>} : memref<32x256xf32, #tpu.memory_space<vmem>>, vector<32x256xf32>,
    } else {
    }
    %c0 = arith.constant 0 : index
    %c0_2 = arith.constant 0 : index
    %4 = vector.load %arg9[%c0, %c0_2] : memref<32x256xf32, #tpu.memory_space<vmem>>, vector<32x256xf32>
    %c0_3 = arith.constant 0 : index
    %c0_4 = arith.constant 0 : index
    %c0_5 = arith.constant 0 : index
    %5 = vector.load %arg3[%c0_3, %c0_4, %c0_5] : memref<1x32x32xbf16, #tpu.memory_space<vmem>>, vector<1x32x32xbf16>
    %6 = vector.shape_cast %5 : vector<1x32x32xbf16> to vector<32x32xbf16>
    %c0_6 = arith.constant 0 : index
    %c0_7 = arith.constant 0 : index
    %c0_8 = arith.constant 0 : index
    %7 = vector.load %arg4[%c0_6, %c0_7, %c0_8] : memref<1x32x256xbf16, #tpu.memory_space<vmem>>, vector<1x32x256xbf16>
    %8 = vector.shape_cast %7 : vector<1x32x256xbf16> to vector<32x256xbf16>
    %cst = arith.constant dense<0.000000e+00> : vector<32x256xf32>
    %9 = tpu.matmul %6, %8, %cst {dimension_numbers = #tpu.dot_dimension_numbers<[1], [0], [0], [1], [0, 0, 1, 1], [], []>} : vector<32x32xbf16>, vector<32x256xbf16>, vector<32x256xf32> -> vector<32x256xf32>
    %10 = arith.addf %4, %9 : vector<32x256xf32>
    %c0_9 = arith.constant 0 : index
    %c0_10 = arith.constant 0 : index
    %11 = vector.load %arg9[%c0_9, %c0_10] : memref<32x256xf32, #tpu.memory_space<vmem>>, vector<32x256xf32>
    tpu.vector_store %arg9[%c0_9, %c0_10], %10 {strides = array<i32>} : memref<32x256xf32, #tpu.memory_space<vmem>>, vector<32x256xf32>,
    %c0_i32_11 = arith.constant 0 : i32
    %12 = arith.cmpi eq, %arg1, %c0_i32_11 : i32
    %13 = arith.andi %0, %12 : i1
    %14 = arith.extui %13 : i1 to i32
    %c0_i32_12 = arith.constant 0 : i32
    %15 = arith.cmpi ne, %14, %c0_i32_12 : i32
    scf.if %15 {
      %cst_14 = arith.constant 0.000000e+00 : f32
      %18 = vector.broadcast %cst_14 : f32 to vector<1x128xf32>
      %c0_15 = arith.constant 0 : index
      %c0_16 = arith.constant 0 : index
      %c0_17 = arith.constant 0 : index
      %19 = vector.load %arg8[%c0_15, %c0_16, %c0_17] : memref<1x1x128xf32, #tpu.memory_space<vmem>>, vector<1x1x128xf32>
      %20 = vector.shape_cast %19 : vector<1x1x128xf32> to vector<1x128xf32>
      %21 = vector.shape_cast %18 : vector<1x128xf32> to vector<1x1x128xf32>
      tpu.vector_store %arg8[%c0_15, %c0_16, %c0_17], %21 {strides = array<i32>} : memref<1x1x128xf32, #tpu.memory_space<vmem>>, vector<1x1x128xf32>,
    } else {
    }
    %16 = arith.extui %0 : i1 to i32
    %c0_i32_13 = arith.constant 0 : i32
    %17 = arith.cmpi ne, %16, %c0_i32_13 : i32
    scf.if %17 {
      %c0_14 = arith.constant 0 : index
      %c0_15 = arith.constant 0 : index
      %18 = vector.load %arg9[%c0_14, %c0_15] : memref<32x256xf32, #tpu.memory_space<vmem>>, vector<32x256xf32>
      %c0_16 = arith.constant 0 : index
      %c0_17 = arith.constant 0 : index
      %c0_18 = arith.constant 0 : index
      %19 = vector.load %arg5[%c0_16, %c0_17, %c0_18] : memref<1x1x256xf32, #tpu.memory_space<vmem>>, vector<1x1x256xf32>
      %20 = vector.shape_cast %19 : vector<1x1x256xf32> to vector<1x256xf32>
      %21 = vector.broadcast %20 : vector<1x256xf32> to vector<32x256xf32>
      %22 = arith.addf %18, %21 : vector<32x256xf32>
      %23 = arith.index_cast %arg0 : i32 to index
      %24 = memref.load %arg6[%23] : memref<2xf32, #tpu.memory_space<smem>>
      %cst_19 = arith.constant 0.000000e+00 : f32
      %25 = vector.broadcast %cst_19 : f32 to vector<32x256xf32>
      %26 = arith.cmpf ogt, %22, %25 : vector<32x256xf32>
      %27 = vector.broadcast %24 : f32 to vector<32x256xf32>
      %28 = arith.mulf %27, %22 : vector<32x256xf32>
      %29 = arith.select %26, %22, %28 : vector<32x256xi1>, vector<32x256xf32>
      %c0_20 = arith.constant 0 : index
      %c0_21 = arith.constant 0 : index
      %c0_22 = arith.constant 0 : index
      %30 = vector.load %arg7[%c0_20, %c0_21, %c0_22] : memref<1x32x256xf32, #tpu.memory_space<vmem>>, vector<1x32x256xf32>
      %31 = vector.shape_cast %30 : vector<1x32x256xf32> to vector<32x256xf32>
      %32 = vector.shape_cast %29 : vector<32x256xf32> to vector<1x32x256xf32>
      tpu.vector_store %arg7[%c0_20, %c0_21, %c0_22], %32 {strides = array<i32>} : memref<1x32x256xf32, #tpu.memory_space<vmem>>, vector<1x32x256xf32>,
      %c0_23 = arith.constant 0 : index
      %c0_24 = arith.constant 0 : index
      %c0_25 = arith.constant 0 : index
      %33 = vector.load %arg8[%c0_23, %c0_24, %c0_25] : memref<1x1x128xf32, #tpu.memory_space<vmem>>, vector<1x1x128xf32>
      %34 = vector.shape_cast %33 : vector<1x1x128xf32> to vector<1x128xf32>
      %35 = vector.extract_strided_slice %29 {offsets = [0, 0], sizes = [32, 128], strides = [1, 1]} : vector<32x256xf32> to vector<32x128xf32>
      %cst_26 = arith.constant dense<0.000000e+00> : vector<128xf32>
      %36 = vector.multi_reduction <add>, %35, %cst_26 [0] : vector<32x128xf32> to vector<128xf32>
      %37 = vector.shape_cast %36 : vector<128xf32> to vector<1x128xf32>
      %38 = arith.addf %34, %37 : vector<1x128xf32>
      %c0_27 = arith.constant 0 : index
      %c0_28 = arith.constant 0 : index
      %c0_29 = arith.constant 0 : index
      %39 = vector.load %arg8[%c0_27, %c0_28, %c0_29] : memref<1x1x128xf32, #tpu.memory_space<vmem>>, vector<1x1x128xf32>
      %40 = vector.shape_cast %39 : vector<1x1x128xf32> to vector<1x128xf32>
      %41 = vector.shape_cast %38 : vector<1x128xf32> to vector<1x1x128xf32>
      tpu.vector_store %arg8[%c0_27, %c0_28, %c0_29], %41 {strides = array<i32>} : memref<1x1x128xf32, #tpu.memory_space<vmem>>, vector<1x1x128xf32>,
    } else {
    }
    return
  }
  func.func @transform_0(%arg0: i32, %arg1: i32, %arg2: i32) -> (i32, i32, i32) {
    %c0_i32 = arith.constant 0 : i32
    return %arg0, %arg1, %arg2 : i32, i32, i32
  }
  func.func @transform_1(%arg0: i32, %arg1: i32, %arg2: i32) -> (i32, i32, i32) {
    %c0_i32 = arith.constant 0 : i32
    %c0_i32_0 = arith.constant 0 : i32
    return %arg0, %arg2, %c0_i32 : i32, i32, i32
  }
  func.func @transform_2(%arg0: i32, %arg1: i32, %arg2: i32) -> (i32, i32, i32) {
    %c0_i32 = arith.constant 0 : i32
    %c0_i32_0 = arith.constant 0 : i32
    %c0_i32_1 = arith.constant 0 : i32
    return %arg0, %c0_i32, %c0_i32_0 : i32, i32, i32
  }
  func.func @transform_3(%arg0: i32, %arg1: i32, %arg2: i32) -> i32 {
    %c0_i32 = arith.constant 0 : i32
    %c0_i32_0 = arith.constant 0 : i32
    return %c0_i32 : i32
  }
  func.func @transform_4(%arg0: i32, %arg1: i32, %arg2: i32) -> (i32, i32, i32) {
    %c0_i32 = arith.constant 0 : i32
    %c0_i32_0 = arith.constant 0 : i32
    return %arg0, %arg1, %c0_i32 : i32, i32, i32
  }
  func.func @transform_5(%arg0: i32, %arg1: i32, %arg2: i32) -> (i32, i32, i32) {
    %c0_i32 = arith.constant 0 : i32
    %c0_i32_0 = arith.constant 0 : i32
    %c0_i32_1 = arith.constant 0 : i32
    return %arg0, %c0_i32, %c0_i32_0 : i32, i32, i32
  }
}

</mosaic_0001>

<bundles_post_ra>
// kernel: tpu_custom_call.1
= control target key start
LH: loop header
LB: loop body
LE: loop exit
PB: predicated region body
PF: predicated region fallthrough
CT: control target
= control target key end

     0   :  { %s1460_s0 = inlined_call_operand.hbm [shape: bf16[2,32,32], index: 0, kind: input, shape index: {}]   ;;  %s1461_s1 = inlined_call_operand.hbm [shape: bf16[2,32,256], index: 1, kind: input, shape index: {}]   ;;  %s1462_s2 = inlined_call_operand.vmem [shape: f32[2,1,256], index: 2, kind: input, shape index: {}]   ;;  %s1463_s3 = inlined_call_operand.vmem [shape: f32[2], index: 3, kind: input, shape index: {}]   ;;  %s1464_s4 = inlined_call_operand.hbm [shape: f32[2,32,256], index: 4, kind: output, shape index: {0}]   ;;  %s1465_s5 = inlined_call_operand.hbm [shape: f32[2,1,128], index: 5, kind: output, shape index: {1}]  }
   0x1   :  { %1471 = sst [smem:[#allocation20_spill]] %s1460_s0 }
   0x2   :  { %1472 = sst [smem:[#allocation21_spill]] %s1463_s3 }
   0x3   :  { %11 = vsyncpa [#allocation4], 0 }
   0x4   :  { %13 = vsyncpa [#allocation4 + $0x1], 0 }
   0x5   :  { %14 = vsyncpa [#allocation8], 0 }
   0x6   :  { %16 = vsyncpa [#allocation8 + $0x1], 0 }
   0x7   :  { %17 = vsyncpa [#allocation6], 0 }
   0x8   :  { %18 = vsyncpa [#allocation5], 0 }
   0x9   :  { %20 = vsyncpa [#allocation5 + $0x1], 0 }
   0xa   :  { %21 = vsyncpa [#allocation12], 0 }
   0xb   :  { %23 = vsyncpa [#allocation12 + $0x1], 0  ;;  %s1160_s18 = smov 0   ;;  %s1162_s19 = smov 0  }
   0xc   :  { %s1164_s20 = smov 0   ;;  %s1166_s21 = smov 0  }
   0xd   :  { %s1168_s22 = smov 0   ;;  %s1170_s23 = smov 0  }
   0xe LB: > { %s781_s24 = sadd.s32 4294967295, %s1115_s23   ;;  %s782_s25 = sadd.s32 4294967294, %s1115_s23   ;;  %s1115_s23 = sphi %s1170_s23, %s29_s23   ;;  %s1111_s22 = sphi %s1168_s22, %s1498_s22   ;;  %s1107_s21 = sphi %s1166_s21, %s1497_s21   ;;  %s1103_s20 = sphi %s1164_s20, %s1496_s20   ;;  %s1099_s19 = sphi %s1162_s19, %s1495_s19   ;;  %s1095_s18 = sphi %s1160_s18, %s1494_s18  }
   0xf   : > { %p66_p0 = scmp.ne.s32.totalorder %s1103_s20, %s1099_s19  ;;  %p67_p1 = scmp.eq.s32.totalorder %s1115_s23, 0 }
  0x10   : > { %p72_p2 = scmp.ne.s32.totalorder %s1099_s19, %s1095_s18  ;;  %p1198_p3 = scmp.eq.s32.totalorder %s781_s24, 0 }
  0x11   : > { %p173_p4 = scmp.eq.s32.totalorder %s781_s24, 1  ;;  %p1202_p5 = por %p67_p1, %p66_p0 }
  0x12   : > { %s1473_s27 = scalar_select %p1198_p3, 1, 0 }
  0x13   : > { %p179_p6 = scmp.eq.s32.totalorder %s782_s25, 1  ;;  %p1208_p7 = por %p1198_p3, %p72_p2 }
  0x14   : > { %p1212_p8 = por %p173_p4, %p66_p0  ;;  %p783_p10 = scmp.ge.s32.totalorder %s1115_s23, 1 }
  0x15   : > { %s1475_s29 = scalar_select %p1208_p7, 1, 0 }
  0x16   : > { %s1476_s30 = scalar_select %p1212_p8, 1, 0 }
  0x17   : > { %p1216_p9 = por %p179_p6, %p72_p2  ;;  %p212_p11 = scmp.lt.s32.totalorder %s1115_s23, 3 }
  0x18   : > { %s1478_s3 = sld [smem:[#allocation21_spill]]  ;;  %p850_p0 = scmp.lt.s32.totalorder %s1115_s23, 2 }
  0x19   : > { %s1477_s6 = scalar_select %p1216_p9, 1, 0 }
  0x1a   : > { %p1225_p12 = pnand %p783_p10, %p212_p11  ;;  %p1235_p2 = pnand %p850_p0, %p1202_p5 }
  0x1b   : > { %s48_s13 = sadd.s32 1, %s1111_s22  ;;  %s1251_s15 = sand.u32 1, %s1103_s20  }
  0x1c   : > { %p831_p1 = pneg %p1225_p12  ;;  %p1246_p6 = scmp.ge.s32.totalorder %s48_s13, 2 }
  0x1e   : > { %s225_s9 = sshll.u32 %s1478_s3, 4  ;;  %p1241_p4 = pnand %p831_p1, %p1198_p3  ;;  %s226_s9 = int_to_ptr.vmem [resolvable:$true] %s225_s9 }
  0x1f   : > { %s918_s16 = scalar_lea.vmem %s226_s9, 16  ;;  %p926_p13 = scmp.lt.s32.totalorder %s226_s9, %s226_s9 }
  0x20   : > { %p919_p10 = scmp.ne.s32.totalorder %s226_s9, %s918_s16  ;;  %p920_p5 = pneg %p1241_p4 }
  0x21   : > { %p927_p9 = scmp.lt.s32.totalorder %s918_s16, %s918_s16 }
  0x22   : > { %p921_p11 = pnand %p920_p5, %p919_p10 }
  0x23   : > { %p928_p1 = por %p927_p9, %p926_p13 }
  0x24   : > { %p922_p0 = pneg %p921_p11 }
  0x26   : > { %p929_p8 = pnand %p928_p1, %p922_p0 }
  0x28   : > { %932 = shalt.err (!%p929_p8)
}
  0x29   : > { %s1117_s17 = smov [#allocation9]   ;;  %s1500_s13 = smov (%p1246_p6, %s48_s13), 0 }
  0x2a   : > { %834 = dma.vmem_to_smem (!%p1241_p4), %s226_s9, 16, %s1117_s17, [#allocation6]  }
  0x2b   : > { %1483 = sst [smem:[#allocation18_spill]] %s1500_s13  ;;  %s786_s24 = sshll.u32 %s1251_s15, 4 }
  0x2c   : > { %s52_s25 = ssub.s32 %s1111_s22, %s1500_s13  ;;  %s812_s28 = sshll.u32 %s1111_s22, 8 }
  0x2d   : > { %p57_p8 = scmp.eq.s32.totalorder %s52_s25, 0  ;;  %s1484_s0 = sld [smem:[#allocation20_spill]] }
  0x2e   : > { %s240_s16 = scalar_lea.vmem [#allocation3], %s786_s24  ;;  %s1485_s9 = sadd.s32 1, %s1103_s20 }
  0x2f   : > { %s250_s26 = sshll.u32 %s240_s16, 4  ;;  %s237_s17 = scalar_lea.sflag [#allocation4], %s1251_s15  ;;  %s1275_s26 = int_to_ptr.vmem [resolvable:$true] %s250_s26 }
  0x30   : > { %s1273_s14 = scalar_select %p57_p8, %s1103_s20, %s1485_s9  }
  0x31   : > { %p935_p13 = pneg %p1235_p2 }
  0x32   : > { %1486 = sst [smem:[#allocation19_spill]] %s1273_s14 }
  0x33   : > { %s1268_s12 = scalar_lea.hbm %s1484_s0, %s812_s28  ;;  %s938_s7 = scalar_lea.hbm %s1484_s0, 512 }
  0x34   : > { %s933_s3 = scalar_lea.hbm %s1268_s12, 256  ;;  %p939_p10 = scmp.lt.u32.totalorder %s1268_s12, %s1484_s0 }
  0x35   : > { %p934_p9 = scmp.ne.s32.totalorder %s1268_s12, %s933_s3  ;;  %p940_p5 = scmp.lt.u32.totalorder %s938_s7, %s933_s3 }
  0x36   : > { %p942_p0 = scmp.lt.u32.totalorder %s933_s3, %s1268_s12 }
  0x37   : > { %p936_p4 = pnand %p935_p13, %p934_p9  ;;  %p941_p11 = por %p940_p5, %p939_p10 }
  0x39   : > { %p937_p6 = pneg %p936_p4  ;;  %p943_p1 = por %p942_p0, %p941_p11 }
  0x3b   : > { %p944_p8 = pnand %p943_p1, %p937_p6 }
  0x3d   : > { %947 = shalt.err (!%p944_p8)
}
  0x3e   : > { %s948_s16 = scalar_lea.vmem %s1275_s26, 256  ;;  %s1118_s9 = smov [#allocation3]  }
  0x3f   : > { %p949_p9 = scmp.ne.s32.totalorder %s1275_s26, %s948_s16  ;;  %s953_s25 = sshll.u32 %s1118_s9, 4  ;;  %s954_s25 = int_to_ptr.vmem [resolvable:$false] %s953_s25 }
  0x40   : > { %s955_s28 = scalar_lea.vmem %s954_s25, 512  ;;  %p956_p7 = scmp.lt.s32.totalorder %s1275_s26, %s954_s25 }
  0x41   : > { %p951_p4 = pnand %p949_p9, %p935_p13  ;;  %p957_p10 = scmp.lt.s32.totalorder %s955_s28, %s948_s16 }
  0x43   : > { %p952_p3 = pneg %p951_p4  ;;  %p958_p5 = por %p957_p10, %p956_p7 }
  0x45   : > { %p959_p11 = pnand %p958_p5, %p952_p3 }
  0x47   : > { %962 = shalt.err (!%p959_p11)
}
  0x48   : > { %s1119_s3 = smov 64   ;;  %s1120_s7 = smov 4  }
  0x49   : > { %838 = dma.hbm_to_vmem [thread:$0]  (!%p1235_p2), %s1268_s12, 256, %s1275_s26, %s237_s17, %s1119_s3, %s1119_s3, %s1120_s7  }
  0x4a   : > { %s789_s24 = sshll.u32 %s1251_s15, 5  ;;  %s813_s8 = sshll.u32 %s1111_s22, 9 }
  0x4b   : > { %s1310_s25 = scalar_lea.hbm %s1461_s1, %s813_s8  ;;  %s264_s28 = scalar_lea.vmem [#allocation7], %s789_s24 }
  0x4c   : > { %s274_s0 = sshll.u32 %s264_s28, 4  ;;  %s261_s13 = scalar_lea.sflag [#allocation8], %s1251_s15  ;;  %s1312_s0 = int_to_ptr.vmem [resolvable:$true] %s274_s0 }
  0x4d   : > { %s963_s14 = scalar_lea.hbm %s1310_s25, 512  ;;  %s968_s17 = scalar_lea.hbm %s1461_s1, 1024 }
  0x4e   : > { %p964_p3 = scmp.ne.s32.totalorder %s1310_s25, %s963_s14  ;;  %p969_p0 = scmp.lt.u32.totalorder %s1310_s25, %s1461_s1 }
  0x4f   : > { %p970_p1 = scmp.lt.u32.totalorder %s968_s17, %s963_s14  ;;  %p972_p9 = scmp.lt.u32.totalorder %s963_s14, %s1310_s25 }
  0x50   : > { %p966_p7 = pnand %p964_p3, %p935_p13 }
  0x51   : > { %p971_p8 = por %p970_p1, %p969_p0 }
  0x52   : > { %p967_p6 = pneg %p966_p7 }
  0x53   : > { %p973_p4 = por %p972_p9, %p971_p8 }
  0x55   : > { %p974_p10 = pnand %p973_p4, %p967_p6 }
  0x57   : > { %977 = shalt.err (!%p974_p10)
}
  0x58   : > { %s978_s24 = scalar_lea.vmem %s1312_s0, 512  ;;  %s1121_s8 = smov [#allocation7]  }
  0x59   : > { %p979_p5 = scmp.ne.s32.totalorder %s1312_s0, %s978_s24  ;;  %s983_s9 = sshll.u32 %s1121_s8, 4  ;;  %s984_s9 = int_to_ptr.vmem [resolvable:$false] %s983_s9 }
  0x5a   : > { %s985_s16 = scalar_lea.vmem %s984_s9, 1024  ;;  %p986_p7 = scmp.lt.s32.totalorder %s1312_s0, %s984_s9 }
  0x5b   : > { %p981_p11 = pnand %p979_p5, %p935_p13  ;;  %p987_p0 = scmp.lt.s32.totalorder %s985_s16, %s978_s24 }
  0x5d   : > { %p982_p3 = pneg %p981_p11  ;;  %p988_p1 = por %p987_p0, %p986_p7 }
  0x5f   : > { %p989_p8 = pnand %p988_p1, %p982_p3 }
  0x61   : > { %992 = shalt.err (!%p989_p8)
}
  0x62   : > { %s1122_s14 = smov 128   ;;  %s1123_s28 = smov 8  }
  0x63   : > { %841 = dma.hbm_to_vmem [thread:$0]  (!%p1235_p2), %s1310_s25, 512, %s1312_s0, %s261_s13, %s1122_s14, %s1122_s14, %s1123_s28  }
  0x64   : > { %293 = sbr.rel (%p1225_p12) target bundleno = 392 (0x188), region = 36  ;;  %s1343_s26 = sand.u32 (!%p1225_p12), 1, %s1099_s19  }
  0x65   : > { %s793_s12 = sshll.u32 (!%p1225_p12), %s1343_s26, 4  ;;  %s296_s17 = scalar_lea.sflag (!%p1225_p12), [#allocation4], %s1343_s26 }
  0x66   : > { %s299_s3 = scalar_lea.vmem (!%p1225_p12), [#allocation3], %s793_s12  ;;  %p1487_p13 = scmp.ne.s32.totalorder (!%p1225_p12), %s1475_s29, 0 }
  0x6b   : > { %1074 = dma.done.wait (%p1487_p13), %s296_s17, 256  }
  0x6c   : > { %1076 = vsyncadd (%p1487_p13), %s296_s17, 4294967040  ;;  %s794_s0 = sshll.u32 %s1343_s26, 5  ;;  %s305_s10 = scalar_lea.sflag [#allocation8], %s1343_s26 }
  0x6d   : > { %s308_s11 = scalar_lea.vmem [#allocation7], %s794_s0 }
  0x6e   : > { %1078 = dma.done.wait (%p1487_p13), %s305_s10, 512  }
  0x6f   : > { %1080 = vsyncadd (%p1487_p13), %s305_s10, 4294966784  ;;  %p1488_p12 = scmp.ne.s32.totalorder %s1473_s27, 0 }
  0x71   : > { %1082 = dma.done.wait (%p1488_p12), [#allocation6], 16  }
  0x72   : > { %1084 = vsyncadd (%p1488_p12), [#allocation6], 4294967280 }
  0x73   : > { %317 = sfence }
  0x74   : > { %v910_v0 = vld [vmem:[%s308_s11 + $0x4] ss:$8 sps:$4 sm:$0xff]   ;;  %v912_v1 = vld [vmem:[%s308_s11] ss:$8 sps:$4 sm:$0xff]   ;;  %v1124_v2 = vmov 0   ;;  %vm419_vm0 = vcmask 261120   ;;  %v514_v8 = vlaneseq }
  0x75   : > { %458 = vmatprep.mubr.bf16.mxu0 %v1124_v2  ;;  %468 = vmatprep.mubr.bf16.mxu1 %v1124_v2  ;;  %v913_v3 = vld [vmem:[%s308_s11 + $0x14] ss:$8 sps:$4 sm:$0xff]   ;;  %v915_v4 = vld [vmem:[%s308_s11 + $0x10] ss:$8 sps:$4 sm:$0xff]   ;;  %s1362_s27 = scalar_lea.vmem [#allocation11], %s1343_s26  ;;  %v1125_v7 = vmov 0.0  }
  0x76   : > { %426 = vmatprep.subr.bf16.mxu0 %v910_v0  ;;  %815 = vmatprep.subr.bf16.mxu1 %v910_v0  ;;  %v916_v5 = vld [vmem:[%s299_s3] sm:$0xff]   ;;  %v917_v6 = vld [vmem:[%s299_s3 + $0x8] sm:$0xff]   ;;  %500 = vst [vmem:[%s1362_s27] sm:$0x1] %v1125_v7  ;;  %p355_p2 = scmp.lt.s32.totalorder %s1107_s21, 1  ;;  %v515_v9 = vshrl.u32 %v514_v8, 7  ;;  %s532_s24 = sld [smem:[#allocation9 + %s1107_s21]] }
  0x77   : > { %427 = vmatpush1.bf16.msra.mxu0 %v912_v1  ;;  %817 = vmatpush1.bf16.msra.mxu1 %v912_v1  ;;  %s796_s8 = sshll.u32 %s1343_s26, 6  ;;  %s814_s9 = sshll.u32 %s1107_s21, 10 }
  0x78   : > { %428 = vmatprep.subr.bf16.mxu0 %v913_v3  ;;  %816 = vmatprep.subr.bf16.mxu1 %v913_v3  ;;  %s356_s29 = scalar_select %p355_p2, %s1107_s21, 1  ;;  %v516_v10 = vsub.s32 0, %v515_v9  ;;  %v520_v12 = vsub.s32 1, %v515_v9 }
  0x79   : > { %s346_s16 = scalar_lea.vmem [#allocation10], %s796_s8  ;;  %s1376_s17 = scalar_lea.hbm %s1464_s4, %s814_s9 }
  0x7a   : > { %s797_s13 = sshll.u32 %s356_s29, 1  ;;  %s599_s14 = sshll.u32 %s346_s16, 4  ;;  %s1378_s14 = int_to_ptr.vmem [resolvable:$true] %s599_s14 }
  0x7b   : > { %429 = vmatpush1.bf16.msra.mxu0 %v915_v4  ;;  %818 = vmatpush1.bf16.msra.mxu1 %v915_v4  ;;  %s358_s7 = scalar_lea.vmem %s1462_s2, %s797_s13  ;;  %s579_s3 = scalar_lea.sflag [#allocation5], %s1343_s26 }
  0x7c   : > { %v512_v11 = vld [vmem:[%s358_s7] sm:$0x3]  ;;  %v541_v16 = vstv %s532_s24  ;;  %s993_s0 = scalar_lea.vmem %s1378_s14, 1024  ;;  %p1489_p9 = scmp.ne.s32.totalorder %s1476_s30, 0 }
  0x7d   : > { %v517_v13 = vrot.slane %v512_v11, %v516_v10  ;;  %v521_v14 = vrot.slane %v512_v11, %v520_v12  ;;  %p994_p6 = scmp.ne.s32.totalorder %s1378_s14, %s993_s0  ;;  %s1126_s10 = smov [#allocation10]  }
  0x7e   : > { %804 = vmatmul.mubr.msk.bf16.vlgmr.msra.gmra.mrb[0].mxu0 %vm419_vm0, %v916_v5  ;;  %805 = vmatmul.mubr.msk.bf16.vlgmr.msra.gmra.mrb[0].mxu1 %vm419_vm0, %v917_v6  ;;  %s997_s11 = sshll.u32 %s1126_s10, 4  ;;  %s998_s11 = int_to_ptr.vmem [resolvable:$false] %s997_s11 }
  0x7f   : > { %p995_p4 = pnand %p994_p6, %p1489_p9  ;;  %s999_s29 = scalar_lea.vmem %s998_s11, 2048 }
  0x80   : > { %p1000_p5 = scmp.lt.s32.totalorder %s1378_s14, %s998_s11  ;;  %p1001_p11 = scmp.lt.s32.totalorder %s999_s29, %s993_s0 }
  0x81   : > { %p996_p10 = pneg %p995_p4 }
  0x82   : > { %p1002_p3 = por %p1001_p11, %p1000_p5 }
  0x84   : > { %p1003_p7 = pnand %p1002_p3, %p996_p10 }
 0x151   : > { %v460_v15 = vpop.f32.mrb[0].mxu0  ;;  %v470_v17 = vpop.f32.mrb[0].mxu1 }
 0x152   : > { %v524_v18 = vadd.f32 %v517_v13, %v460_v15  ;;  %v528_v19 = vadd.f32 %v517_v13, %v470_v17  ;;  %v462_v20 = vpop.f32.mrb[1].mxu0  ;;  %v472_v21 = vpop.f32.mrb[1].mxu1 }
 0x153   : > { %v525_v22 = vadd.f32 %v521_v14, %v462_v20  ;;  %v529_v23 = vadd.f32 %v521_v14, %v472_v21  ;;  %v464_v24 = vpop.f32.mrb[2].mxu0  ;;  %v474_v25 = vpop.f32.mrb[2].mxu1 }
 0x154   : > { %vm533_vm1 = vcmp.gt.f32.partialorder %v524_v18, 0.0  ;;  %v542_v26 = vmul.f32 %v541_v16, %v524_v18  ;;  %vm537_vm2 = vcmp.gt.f32.partialorder %v528_v19, 0.0  ;;  %v546_v27 = vmul.f32 %v541_v16, %v528_v19  ;;  %v466_v28 = vpop.f32.mrb[3].mxu0  ;;  %v476_v29 = vpop.f32.mrb[3].mxu1 }
 0x155   : > { %vm534_vm3 = vcmp.gt.f32.partialorder %v525_v22, 0.0  ;;  %v543_v30 = vmul.f32 %v541_v16, %v525_v22  ;;  %vm538_vm4 = vcmp.gt.f32.partialorder %v529_v23, 0.0  ;;  %v547_v31 = vmul.f32 %v541_v16, %v529_v23 }
 0x156   : > { %v550_v32 = vsel %vm533_vm1, %v524_v18, %v542_v26  ;;  %v554_v33 = vsel %vm537_vm2, %v528_v19, %v546_v27  ;;  %v526_v34 = vadd.f32 %v517_v13, %v464_v24  ;;  %v530_v35 = vadd.f32 %v517_v13, %v474_v25 }
 0x157   : > { %558 = vst [vmem:[%s346_s16] sm:$0xff] %v550_v32  ;;  %562 = vst [vmem:[%s346_s16 + $0x20] sm:$0xff] %v554_v33  ;;  %v551_v36 = vsel %vm534_vm3, %v525_v22, %v543_v30  ;;  %v555_v37 = vsel %vm538_vm4, %v529_v23, %v547_v31  ;;  %v527_v38 = vadd.f32 %v521_v14, %v466_v28 }
 0x158   : > { %v531_v39 = vadd.f32 %v521_v14, %v476_v29  ;;  %559 = vst [vmem:[%s346_s16 + $0x8] sm:$0xff] %v551_v36  ;;  %563 = vst [vmem:[%s346_s16 + $0x28] sm:$0xff] %v555_v37  ;;  %vm535_vm5 = vcmp.gt.f32.partialorder %v526_v34, 0.0  ;;  %v544_v40 = vmul.f32 %v541_v16, %v526_v34  ;;  %vm539_vm6 = vcmp.gt.f32.partialorder %v530_v35, 0.0 }
 0x159   : > { %v548_v41 = vmul.f32 %v541_v16, %v530_v35  ;;  %vm536_vm7 = vcmp.gt.f32.partialorder %v527_v38, 0.0  ;;  %v545_v42 = vmul.f32 %v541_v16, %v527_v38 }
 0x15a   : > { %vm540_vm8 = vcmp.gt.f32.partialorder %v531_v39, 0.0  ;;  %v549_v43 = vmul.f32 %v541_v16, %v531_v39  ;;  %v552_v44 = vsel %vm535_vm5, %v526_v34, %v544_v40 }
 0x15b   : > { %v556_v45 = vsel %vm539_vm6, %v530_v35, %v548_v41  ;;  %560 = vst [vmem:[%s346_s16 + $0x10] sm:$0xff] %v552_v44  ;;  %v567_v46 = vadd.f32 %v552_v44, %v550_v32  ;;  %v553_v47 = vsel %vm536_vm7, %v527_v38, %v545_v42 }
 0x15c   : > { %564 = vst [vmem:[%s346_s16 + $0x30] sm:$0xff] %v556_v45  ;;  %v557_v48 = vsel %vm540_vm8, %v531_v39, %v549_v43  ;;  %561 = vst [vmem:[%s346_s16 + $0x18] sm:$0xff] %v553_v47 }
 0x15d   : > { %565 = vst [vmem:[%s346_s16 + $0x38] sm:$0xff] %v557_v48  ;;  %v568_v49 = vadd.f32 %v567_v46, %v554_v33 }
 0x15e   : > { %1006 = shalt.err (!%p1003_p7)
}
 0x15f   : > { %s1007_s13 = scalar_lea.hbm %s1376_s17, 1024  ;;  %s1011_s7 = scalar_lea.hbm %s1464_s4, 2048 }
 0x160   : > { %p1008_p0 = scmp.ne.s32.totalorder %s1376_s17, %s1007_s13  ;;  %p1012_p13 = scmp.lt.u32.totalorder %s1376_s17, %s1464_s4 }
 0x161   : > { %p1013_p12 = scmp.lt.u32.totalorder %s1011_s7, %s1007_s13  ;;  %p1015_p6 = scmp.lt.u32.totalorder %s1007_s13, %s1376_s17 }
 0x162   : > { %p1009_p1 = pnand %p1008_p0, %p1489_p9 }
 0x163   : > { %p1014_p2 = por %p1013_p12, %p1012_p13 }
 0x164   : > { %p1010_p8 = pneg %p1009_p1 }
 0x165   : > { %p1016_p4 = por %p1015_p6, %p1014_p2 }
 0x167   : > { %p1017_p10 = pnand %p1016_p4, %p1010_p8 }
 0x169   : > { %1020 = shalt.err (!%p1017_p10)
}
 0x16a   : > { %s1127_s9 = smov 256   ;;  %s1128_s16 = smov 16   ;;  %v569_v50 = vadd.f32 %v568_v49, %v556_v45  ;;  %v566_v56 = vld [vmem:[%s1362_s27] sm:$0x1] }
 0x16b   : > { %827 = dma.vmem_to_hbm [thread:$0]  (%p1489_p9), %s1378_s14, 1024, %s1376_s17, %s579_s3, %s1127_s9, %s1127_s9, %s1128_s16  }
 0x16c   : > { %v570_v51 = vrot.slane %v569_v50, 4  ;;  %s809_s28 = sshll.u32 %s1107_s21, 4  ;;  %s615_s12 = sshll.u32 %s1362_s27, 4  ;;  %s1412_s12 = int_to_ptr.vmem [resolvable:$true] %s615_s12 }
 0x16d   : > { %s1410_s11 = scalar_lea.hbm %s1465_s5, %s809_s28  ;;  %s584_s14 = scalar_lea.sflag [#allocation12], %s1343_s26 }
 0x16e   : > { %v571_v52 = vadd.f32 %v570_v51, %v569_v50  ;;  %s1021_s17 = scalar_lea.vmem %s1412_s12, 16  ;;  %s1129_s21 = smov [#allocation11]  }
 0x16f   : > { %p1022_p5 = scmp.ne.s32.totalorder %s1412_s12, %s1021_s17  ;;  %s1025_s3 = sshll.u32 %s1129_s21, 4  ;;  %s1026_s3 = int_to_ptr.vmem [resolvable:$false] %s1025_s3 }
 0x170   : > { %v572_v53 = vrot.slane %v571_v52, 2  ;;  %s1027_s29 = scalar_lea.vmem %s1026_s3, 32  ;;  %p1028_p7 = scmp.lt.s32.totalorder %s1412_s12, %s1026_s3 }
 0x171   : > { %p1023_p11 = pnand %p1022_p5, %p1489_p9  ;;  %p1029_p0 = scmp.lt.s32.totalorder %s1027_s29, %s1021_s17 }
 0x172   : > { %v573_v54 = vadd.f32 %v572_v53, %v571_v52 }
 0x173   : > { %p1024_p3 = pneg %p1023_p11  ;;  %p1030_p1 = por %p1029_p0, %p1028_p7 }
 0x174   : > { %v574_v55 = vrot.slane %v573_v54, 1 }
 0x175   : > { %p1031_p8 = pnand %p1030_p1, %p1024_p3 }
 0x176   : > { %v575_v57 = vadd.f32 %v574_v55, %v573_v54 }
 0x178   : > { %v576_v58 = vadd.f32 %v575_v57, %v566_v56 }
 0x17a   : > { %577 = vst [vmem:[%s1362_s27] sm:$0x1] %v576_v58 }
 0x17b   : > { %1034 = shalt.err (!%p1031_p8)
}
 0x17c   : > { %s1035_s26 = scalar_lea.hbm %s1410_s11, 16  ;;  %s1039_s15 = scalar_lea.hbm %s1465_s5, 32 }
 0x17d   : > { %p1036_p13 = scmp.ne.s32.totalorder %s1410_s11, %s1035_s26  ;;  %p1040_p6 = scmp.lt.u32.totalorder %s1410_s11, %s1465_s5 }
 0x17e   : > { %p1041_p4 = scmp.lt.u32.totalorder %s1039_s15, %s1035_s26  ;;  %p1043_p5 = scmp.lt.u32.totalorder %s1035_s26, %s1410_s11 }
 0x17f   : > { %p1037_p12 = pnand %p1036_p13, %p1489_p9 }
 0x180   : > { %p1042_p10 = por %p1041_p4, %p1040_p6 }
 0x181   : > { %p1038_p2 = pneg %p1037_p12 }
 0x182   : > { %p1044_p11 = por %p1043_p5, %p1042_p10 }
 0x184   : > { %p1045_p3 = pnand %p1044_p11, %p1038_p2 }
 0x186   : > { %1048 = shalt.err (!%p1045_p3)
}
 0x187   : > { %828 = dma.vmem_to_hbm [thread:$0]  (%p1489_p9), %s1412_s12, 16, %s1410_s11, %s584_s14  }
 0x188 PF: > { %s627_s24 = sand.u32 1, %s1095_s18   ;;  %p1490_p7 = scmp.ne.s32.totalorder %s1477_s6, 0 }
 0x189   : > { %p1491_p0 = scmp.ge.s32.totalorder %s1115_s23, 2  ;;  %s628_s8 = scalar_lea.sflag [#allocation5], %s627_s24 }
 0x18b   : > { %p843_p1 = pnand %p1491_p0, %p1490_p7 }
 0x18d   : > { %1086 = dma.done.wait (!%p843_p1), %s628_s8, 1024  }
 0x18e   : > { %1088 = vsyncadd (!%p843_p1), %s628_s8, 4294966272  ;;  %s637_s9 = scalar_lea.sflag [#allocation12], %s627_s24 }
 0x18f   : > { %1090 = dma.done.wait (!%p843_p1), %s637_s9, 16  }
 0x190   : > { %1092 = vsyncadd (!%p843_p1), %s637_s9, 4294967280  ;;  %s29_s23 = sadd.s32 1, %s1115_s23   ;;  %s1492_s30 = sld [smem:[#allocation19_spill]] }
 0x191   : > { %p26_p8 = scmp.ge.s32.totalorder %s29_s23, 4   ;;  %s1493_s16 = sld [smem:[#allocation18_spill]] }
 0x192   : > { %s1494_s18 = smov %s1099_s19  ;;  %s1495_s19 = smov %s1103_s20 }
 0x193   : > { %s1497_s21 = smov %s1111_s22  ;;  %28 = sbr.rel (!%p26_p8) target bundleno = 14 (0xe), region = 131 }
 0x196   : > { %s1496_s20 = smov %s1492_s30 }
 0x197   : > { %s1498_s22 = smov %s1493_s16 }
 0x19a   :  { %641 = vsyncpa [#allocation4], 1 }
 0x19b   :  { %643 = vsyncpa [#allocation4 + $0x1], 1 }
 0x19c   :  { %644 = vsyncpa [#allocation8], 1 }
 0x19d   :  { %646 = vsyncpa [#allocation8 + $0x1], 1 }
 0x19e   :  { %647 = vsyncpa [#allocation5], 1 }
 0x19f   :  { %649 = vsyncpa [#allocation5 + $0x1], 1 }
 0x1a0   :  { %650 = vsyncpa [#allocation12], 1 }
 0x1a1   :  { %652 = vsyncpa [#allocation12 + $0x1], 1 }
 0x1a2   :  { %653 = vsyncpa [#allocation6], 1 }
 0x1a3   :  { %655 = vsyncpa [#allocation6 + $0x1], 1 }

</bundles_post_ra>
